<compile_context>
chip_gen: v5e
topology: v5e:2x2
jax: 0.10.0
libtpu: 0.0.40
codegen_flags: <defaults>
</compile_context>

<pallas_src>
import functools

import jax
import jax.numpy as jnp
from jax.experimental import pallas as pl
from jax.experimental.pallas import tpu as pltpu


def _round_up(x, m):
    return (x + m - 1) // m * m


def _conv_im2col_kernel(x_ref, w_ref, out_ref, col_ref, *,
                        K, Cin, Wp, B, M_TILE, n_mt):
    """B padded images, one M tile -> (B, Cout, M_TILE) via a single GEMM.

    x_ref:   (B, Cin, L)          flattened zero-padded images (+ tail slack)
    w_ref:   (Cout, K*K*Cin)      weight, cols ordered (kh, kw, ci)
    out_ref: (B, Cout, M_TILE)    dense output over window starts m = h*Wp + w
    col_ref: (K*K*Cin, B*M_TILE)  lane-dense im2col slab (VMEM scratch)
    """
    if n_mt > 1:
        m_base = pl.multiple_of(pl.program_id(1) * M_TILE, 128)
    else:
        m_base = 0  # fully static path when the whole M fits one tile

    # Build the im2col slab.  Every tap (kh, kw) of every image is a pure
    # lane-offset slice of the flattened zero-padded image; the zero padding
    # handles all spatial boundaries (no edge masks / iota / where).  Slicing
    # the ref directly keeps the shift in the load; sublane starts (t*Cin,
    # Cin padded to 8) and lane starts/extents (multiples of 128) are aligned,
    # so the slab writes are unmasked full-tile stores.
    for b in range(B):
        for kh in range(K):
            for kw in range(K):
                t = kh * K + kw
                off = kh * Wp + kw
                col_ref[pl.ds(t * Cin, Cin), pl.ds(b * M_TILE, M_TILE)] = (
                    x_ref[b, :, pl.ds(m_base + off, M_TILE)]
                )

    # One GEMM for all B images in this step: contraction dim = K*K*Cin, the
    # batched spatial axis (B*M_TILE lanes) on the MXU output lane dimension.
    res = jnp.dot(w_ref[...], col_ref[...], preferred_element_type=jnp.float32)

    # Scatter per-image results; slice starts are multiples of 128 lanes, so
    # this is pure vreg selection (no XLU) followed by lane-dense stores.
    for b in range(B):
        out_ref[b] = res[:, b * M_TILE:(b + 1) * M_TILE].astype(out_ref.dtype)


def conv2d_pallas(x_nchw, weight_oihw, stride=1):
    """Forward of module C: same-padded KxK conv, no bias. NCHW in / NCHW out."""
    N, Cin, H, W = x_nchw.shape
    Cout, cin_w, KH, KW = weight_oihw.shape
    assert cin_w == Cin and KH == KW
    K = KH
    assert K % 2 == 1, "module C uses padding=(K-1)//2; odd kernel size assumed"
    P = (K - 1) // 2
    s = int(stride)

    Hp, Wp = H + 2 * P, W + 2 * P

    # Channel padding so slab rows / output sublanes are 8-aligned (zero
    # weights in the padded channels contribute exactly zero).
    Cin_p = _round_up(Cin, 8)
    Cout_p = _round_up(Cout, 8)
    KKC = K * K * Cin_p

    # Dense window-start positions per image, padded to a multiple of 128
    # lanes, then optionally tiled so the im2col slab stays VMEM-friendly
    # (earliest limit is v7x's 64 MiB physical VMEM).
    M = H * Wp
    M_TILE_CAP = 2048                      # lanes per M tile at production sizes
    Mp = _round_up(M, 128)
    if Mp <= M_TILE_CAP:
        M_TILE, n_mt = Mp, 1
    else:
        M_TILE = M_TILE_CAP
        n_mt = (Mp + M_TILE - 1) // M_TILE
        Mp = n_mt * M_TILE

    # Fold as many images as possible onto the lane axis of one GEMM.
    SLAB_BUDGET = 8 * 1024 * 1024          # f32 bytes of im2col slab per step
    LANE_BUDGET = 4096                     # lanes of GEMM output per step
    B = 1
    for cand in range(N, 0, -1):
        if N % cand:
            continue
        if cand * M_TILE <= LANE_BUDGET and KKC * cand * M_TILE * 4 <= SLAB_BUDGET:
            B = cand
            break
    n_bt = N // B

    # Flattened per-image length: the last M tile plus the largest tap offset
    # must stay in bounds; everything past the real padded image is zeros, and
    # the extra lanes only feed junk output columns that are dropped below.
    max_off = (K - 1) * Wp + (K - 1)
    L = _round_up(Mp + max_off, 128)

    # One-time input prep in XLA/HBM: zero-pad spatially and on channels,
    # flatten row-major, zero-fill the tail slack.
    xp = jnp.pad(x_nchw.astype(jnp.float32),
                 ((0, 0), (0, Cin_p - Cin), (P, P), (P, P)))
    xf = jnp.pad(xp.reshape(N, Cin_p, Hp * Wp),
                 ((0, 0), (0, 0), (0, L - Hp * Wp)))

    # Weight (Cout, Cin, K, K) -> (Cout_p, K*K*Cin_p), col order (kh, kw, ci)
    # matching the slab row order; padded channels are zero.
    w_t = jnp.transpose(weight_oihw.astype(jnp.float32), (0, 2, 3, 1))
    w_t = jnp.pad(w_t, ((0, Cout_p - Cout), (0, 0), (0, 0), (0, Cin_p - Cin)))
    w_t = w_t.reshape(Cout_p, KKC)

    kernel = functools.partial(
        _conv_im2col_kernel,
        K=K, Cin=Cin_p, Wp=Wp, B=B, M_TILE=M_TILE, n_mt=n_mt)

    grid_spec = pltpu.PrefetchScalarGridSpec(
        num_scalar_prefetch=0,
        grid=(n_bt, n_mt),
        in_specs=[
            pl.BlockSpec((B, Cin_p, L), lambda i, j: (i, 0, 0)),
            pl.BlockSpec((Cout_p, KKC), lambda i, j: (0, 0)),
        ],
        out_specs=pl.BlockSpec((B, Cout_p, M_TILE), lambda i, j: (i, 0, j)),
        scratch_shapes=[pltpu.VMEM((KKC, B * M_TILE), jnp.float32)],
    )
    out_flat = pl.pallas_call(
        kernel,
        out_shape=jax.ShapeDtypeStruct((N, Cout_p, Mp), jnp.float32),
        grid_spec=grid_spec,
        compiler_params=pltpu.CompilerParams(
            dimension_semantics=("parallel", "parallel"),
            vmem_limit_bytes=32 * 1024 * 1024,
        ),
    )(xf, w_t)

    # (N, Cout_p, Mp) -> (N, Cout, H, W): drop channel/lane padding and the
    # (Wp - W) junk columns of the dense window-start layout.
    y = out_flat[:, :Cout, :M].reshape(N, Cout, H, Wp)[:, :, :, :W]
    if s > 1:
        # TODO(synk): stride > 1 is realized by subsampling the dense stride-1
        # output (exactly equivalent, but computes ~s^2 more positions than
        # needed); a strided im2col needs a 2-D (Hp, Wp) in-VMEM layout.
        y = y[:, :, ::s, ::s]
    return y


def conv2d_reference(x_nchw, weight_oihw, stride=1):
    K = weight_oihw.shape[-1]
    P = (K - 1) // 2
    return jax.lax.conv_general_dilated(
        x_nchw, weight_oihw,
        window_strides=(stride, stride),
        padding=[(P, P), (P, P)],
        dimension_numbers=("NCHW", "OIHW", "NCHW"),
        precision=jax.lax.Precision.HIGHEST,
    )


if __name__ == "__main__":
    key = jax.random.PRNGKey(0)
    kx, k3, k5 = jax.random.split(key, 3)

    N, Cin, H, W = 2, 8, 16, 16
    Cout = 16
    x = jax.random.normal(kx, (N, Cin, H, W), jnp.float32)

    def run_and_check(K, stride, wkey):
        w = jax.random.normal(wkey, (Cout, Cin, K, K), jnp.float32)
        w = w * (1.0 / float(Cin * K * K) ** 0.5)
        out = jax.block_until_ready(conv2d_pallas(x, w, stride=stride))
        ref = conv2d_reference(x, w, stride=stride)
        assert out.shape == ref.shape, (out.shape, ref.shape)
        err = float(jnp.max(jnp.abs(out - ref)))
        # f32 path end-to-end; tolerance tightened vs. the previous 5e-2.
        assert err < 1e-3, f"K={K} stride={stride}: max abs err {err}"

    run_and_check(3, 1, k3)   # C(nIn=8, nOut=16, kSize=3)
    run_and_check(5, 1, k5)   # C(nIn=8, nOut=16, kSize=5)
    run_and_check(3, 2, k3)   # C(nIn=8, nOut=16, kSize=3, stride=2)

    print("KERNEL_OK")
</pallas_src>

<mosaic_0001>
module attributes {stable_mosaic.version = 11 : i64} {
  func.func @_conv_im2col_kernel(%arg0: i32, %arg1: i32, %arg2: memref<2x8x512xf32, #tpu.memory_space<vmem>>, %arg3: memref<16x72xf32, #tpu.memory_space<vmem>>, %arg4: memref<2x16x384xf32, #tpu.memory_space<vmem>>, %arg5: memref<72x768xf32, #tpu.memory_space<vmem>>) attributes {dimension_semantics = [#tpu.dimension_semantics<parallel>, #tpu.dimension_semantics<parallel>], iteration_bounds = array<i64: 1, 1>, scalar_prefetch = 0 : i64, scratch_operands = 1 : i64, tpu.core_type = #tpu.core_type<tc>, window_params = [{transform_indices = @transform_0, window_bounds = array<i64: 2, 8, 512>}, {pipeline_mode = #tpu.pipeline_mode<synchronous>, transform_indices = @transform_1, window_bounds = array<i64: 16, 72>}, {transform_indices = @transform_2, window_bounds = array<i64: 2, 16, 384>}]} {
    %c0 = arith.constant 0 : index
    %c0_0 = arith.constant 0 : index
    %c0_1 = arith.constant 0 : index
    %0 = vector.load %arg2[%c0, %c0_0, %c0_1] : memref<2x8x512xf32, #tpu.memory_space<vmem>>, vector<1x8x384xf32>
    %1 = vector.shape_cast %0 : vector<1x8x384xf32> to vector<8x384xf32>
    %c0_2 = arith.constant 0 : index
    %c0_3 = arith.constant 0 : index
    %2 = vector.load %arg5[%c0_2, %c0_3] : memref<72x768xf32, #tpu.memory_space<vmem>>, vector<8x384xf32>
    tpu.vector_store %arg5[%c0_2, %c0_3], %1 {strides = array<i32>} : memref<72x768xf32, #tpu.memory_space<vmem>>, vector<8x384xf32>,
    %c0_4 = arith.constant 0 : index
    %c0_5 = arith.constant 0 : index
    %c1 = arith.constant 1 : index
    %3 = vector.load %arg2[%c0_4, %c0_5, %c1] : memref<2x8x512xf32, #tpu.memory_space<vmem>>, vector<1x8x384xf32>
    %4 = vector.shape_cast %3 : vector<1x8x384xf32> to vector<8x384xf32>
    %c8 = arith.constant 8 : index
    %c0_6 = arith.constant 0 : index
    %5 = vector.load %arg5[%c8, %c0_6] : memref<72x768xf32, #tpu.memory_space<vmem>>, vector<8x384xf32>
    tpu.vector_store %arg5[%c8, %c0_6], %4 {strides = array<i32>} : memref<72x768xf32, #tpu.memory_space<vmem>>, vector<8x384xf32>,
    %c0_7 = arith.constant 0 : index
    %c0_8 = arith.constant 0 : index
    %c2 = arith.constant 2 : index
    %6 = vector.load %arg2[%c0_7, %c0_8, %c2] : memref<2x8x512xf32, #tpu.memory_space<vmem>>, vector<1x8x384xf32>
    %7 = vector.shape_cast %6 : vector<1x8x384xf32> to vector<8x384xf32>
    %c16 = arith.constant 16 : index
    %c0_9 = arith.constant 0 : index
    %8 = vector.load %arg5[%c16, %c0_9] : memref<72x768xf32, #tpu.memory_space<vmem>>, vector<8x384xf32>
    tpu.vector_store %arg5[%c16, %c0_9], %7 {strides = array<i32>} : memref<72x768xf32, #tpu.memory_space<vmem>>, vector<8x384xf32>,
    %c0_10 = arith.constant 0 : index
    %c0_11 = arith.constant 0 : index
    %c18 = arith.constant 18 : index
    %9 = vector.load %arg2[%c0_10, %c0_11, %c18] : memref<2x8x512xf32, #tpu.memory_space<vmem>>, vector<1x8x384xf32>
    %10 = vector.shape_cast %9 : vector<1x8x384xf32> to vector<8x384xf32>
    %c24 = arith.constant 24 : index
    %c0_12 = arith.constant 0 : index
    %11 = vector.load %arg5[%c24, %c0_12] : memref<72x768xf32, #tpu.memory_space<vmem>>, vector<8x384xf32>
    tpu.vector_store %arg5[%c24, %c0_12], %10 {strides = array<i32>} : memref<72x768xf32, #tpu.memory_space<vmem>>, vector<8x384xf32>,
    %c0_13 = arith.constant 0 : index
    %c0_14 = arith.constant 0 : index
    %c19 = arith.constant 19 : index
    %12 = vector.load %arg2[%c0_13, %c0_14, %c19] : memref<2x8x512xf32, #tpu.memory_space<vmem>>, vector<1x8x384xf32>
    %13 = vector.shape_cast %12 : vector<1x8x384xf32> to vector<8x384xf32>
    %c32 = arith.constant 32 : index
    %c0_15 = arith.constant 0 : index
    %14 = vector.load %arg5[%c32, %c0_15] : memref<72x768xf32, #tpu.memory_space<vmem>>, vector<8x384xf32>
    tpu.vector_store %arg5[%c32, %c0_15], %13 {strides = array<i32>} : memref<72x768xf32, #tpu.memory_space<vmem>>, vector<8x384xf32>,
    %c0_16 = arith.constant 0 : index
    %c0_17 = arith.constant 0 : index
    %c20 = arith.constant 20 : index
    %15 = vector.load %arg2[%c0_16, %c0_17, %c20] : memref<2x8x512xf32, #tpu.memory_space<vmem>>, vector<1x8x384xf32>
    %16 = vector.shape_cast %15 : vector<1x8x384xf32> to vector<8x384xf32>
    %c40 = arith.constant 40 : index
    %c0_18 = arith.constant 0 : index
    %17 = vector.load %arg5[%c40, %c0_18] : memref<72x768xf32, #tpu.memory_space<vmem>>, vector<8x384xf32>
    tpu.vector_store %arg5[%c40, %c0_18], %16 {strides = array<i32>} : memref<72x768xf32, #tpu.memory_space<vmem>>, vector<8x384xf32>,
    %c0_19 = arith.constant 0 : index
    %c0_20 = arith.constant 0 : index
    %c36 = arith.constant 36 : index
    %18 = vector.load %arg2[%c0_19, %c0_20, %c36] : memref<2x8x512xf32, #tpu.memory_space<vmem>>, vector<1x8x384xf32>
    %19 = vector.shape_cast %18 : vector<1x8x384xf32> to vector<8x384xf32>
    %c48 = arith.constant 48 : index
    %c0_21 = arith.constant 0 : index
    %20 = vector.load %arg5[%c48, %c0_21] : memref<72x768xf32, #tpu.memory_space<vmem>>, vector<8x384xf32>
    tpu.vector_store %arg5[%c48, %c0_21], %19 {strides = array<i32>} : memref<72x768xf32, #tpu.memory_space<vmem>>, vector<8x384xf32>,
    %c0_22 = arith.constant 0 : index
    %c0_23 = arith.constant 0 : index
    %c37 = arith.constant 37 : index
    %21 = vector.load %arg2[%c0_22, %c0_23, %c37] : memref<2x8x512xf32, #tpu.memory_space<vmem>>, vector<1x8x384xf32>
    %22 = vector.shape_cast %21 : vector<1x8x384xf32> to vector<8x384xf32>
    %c56 = arith.constant 56 : index
    %c0_24 = arith.constant 0 : index
    %23 = vector.load %arg5[%c56, %c0_24] : memref<72x768xf32, #tpu.memory_space<vmem>>, vector<8x384xf32>
    tpu.vector_store %arg5[%c56, %c0_24], %22 {strides = array<i32>} : memref<72x768xf32, #tpu.memory_space<vmem>>, vector<8x384xf32>,
    %c0_25 = arith.constant 0 : index
    %c0_26 = arith.constant 0 : index
    %c38 = arith.constant 38 : index
    %24 = vector.load %arg2[%c0_25, %c0_26, %c38] : memref<2x8x512xf32, #tpu.memory_space<vmem>>, vector<1x8x384xf32>
    %25 = vector.shape_cast %24 : vector<1x8x384xf32> to vector<8x384xf32>
    %c64 = arith.constant 64 : index
    %c0_27 = arith.constant 0 : index
    %26 = vector.load %arg5[%c64, %c0_27] : memref<72x768xf32, #tpu.memory_space<vmem>>, vector<8x384xf32>
    tpu.vector_store %arg5[%c64, %c0_27], %25 {strides = array<i32>} : memref<72x768xf32, #tpu.memory_space<vmem>>, vector<8x384xf32>,
    %c1_28 = arith.constant 1 : index
    %c0_29 = arith.constant 0 : index
    %c0_30 = arith.constant 0 : index
    %27 = vector.load %arg2[%c1_28, %c0_29, %c0_30] : memref<2x8x512xf32, #tpu.memory_space<vmem>>, vector<1x8x384xf32>
    %28 = vector.shape_cast %27 : vector<1x8x384xf32> to vector<8x384xf32>
    %c0_31 = arith.constant 0 : index
    %c384 = arith.constant 384 : index
    %29 = vector.load %arg5[%c0_31, %c384] : memref<72x768xf32, #tpu.memory_space<vmem>>, vector<8x384xf32>
    tpu.vector_store %arg5[%c0_31, %c384], %28 {strides = array<i32>} : memref<72x768xf32, #tpu.memory_space<vmem>>, vector<8x384xf32>,
    %c1_32 = arith.constant 1 : index
    %c0_33 = arith.constant 0 : index
    %c1_34 = arith.constant 1 : index
    %30 = vector.load %arg2[%c1_32, %c0_33, %c1_34] : memref<2x8x512xf32, #tpu.memory_space<vmem>>, vector<1x8x384xf32>
    %31 = vector.shape_cast %30 : vector<1x8x384xf32> to vector<8x384xf32>
    %c8_35 = arith.constant 8 : index
    %c384_36 = arith.constant 384 : index
    %32 = vector.load %arg5[%c8_35, %c384_36] : memref<72x768xf32, #tpu.memory_space<vmem>>, vector<8x384xf32>
    tpu.vector_store %arg5[%c8_35, %c384_36], %31 {strides = array<i32>} : memref<72x768xf32, #tpu.memory_space<vmem>>, vector<8x384xf32>,
    %c1_37 = arith.constant 1 : index
    %c0_38 = arith.constant 0 : index
    %c2_39 = arith.constant 2 : index
    %33 = vector.load %arg2[%c1_37, %c0_38, %c2_39] : memref<2x8x512xf32, #tpu.memory_space<vmem>>, vector<1x8x384xf32>
    %34 = vector.shape_cast %33 : vector<1x8x384xf32> to vector<8x384xf32>
    %c16_40 = arith.constant 16 : index
    %c384_41 = arith.constant 384 : index
    %35 = vector.load %arg5[%c16_40, %c384_41] : memref<72x768xf32, #tpu.memory_space<vmem>>, vector<8x384xf32>
    tpu.vector_store %arg5[%c16_40, %c384_41], %34 {strides = array<i32>} : memref<72x768xf32, #tpu.memory_space<vmem>>, vector<8x384xf32>,
    %c1_42 = arith.constant 1 : index
    %c0_43 = arith.constant 0 : index
    %c18_44 = arith.constant 18 : index
    %36 = vector.load %arg2[%c1_42, %c0_43, %c18_44] : memref<2x8x512xf32, #tpu.memory_space<vmem>>, vector<1x8x384xf32>
    %37 = vector.shape_cast %36 : vector<1x8x384xf32> to vector<8x384xf32>
    %c24_45 = arith.constant 24 : index
    %c384_46 = arith.constant 384 : index
    %38 = vector.load %arg5[%c24_45, %c384_46] : memref<72x768xf32, #tpu.memory_space<vmem>>, vector<8x384xf32>
    tpu.vector_store %arg5[%c24_45, %c384_46], %37 {strides = array<i32>} : memref<72x768xf32, #tpu.memory_space<vmem>>, vector<8x384xf32>,
    %c1_47 = arith.constant 1 : index
    %c0_48 = arith.constant 0 : index
    %c19_49 = arith.constant 19 : index
    %39 = vector.load %arg2[%c1_47, %c0_48, %c19_49] : memref<2x8x512xf32, #tpu.memory_space<vmem>>, vector<1x8x384xf32>
    %40 = vector.shape_cast %39 : vector<1x8x384xf32> to vector<8x384xf32>
    %c32_50 = arith.constant 32 : index
    %c384_51 = arith.constant 384 : index
    %41 = vector.load %arg5[%c32_50, %c384_51] : memref<72x768xf32, #tpu.memory_space<vmem>>, vector<8x384xf32>
    tpu.vector_store %arg5[%c32_50, %c384_51], %40 {strides = array<i32>} : memref<72x768xf32, #tpu.memory_space<vmem>>, vector<8x384xf32>,
    %c1_52 = arith.constant 1 : index
    %c0_53 = arith.constant 0 : index
    %c20_54 = arith.constant 20 : index
    %42 = vector.load %arg2[%c1_52, %c0_53, %c20_54] : memref<2x8x512xf32, #tpu.memory_space<vmem>>, vector<1x8x384xf32>
    %43 = vector.shape_cast %42 : vector<1x8x384xf32> to vector<8x384xf32>
    %c40_55 = arith.constant 40 : index
    %c384_56 = arith.constant 384 : index
    %44 = vector.load %arg5[%c40_55, %c384_56] : memref<72x768xf32, #tpu.memory_space<vmem>>, vector<8x384xf32>
    tpu.vector_store %arg5[%c40_55, %c384_56], %43 {strides = array<i32>} : memref<72x768xf32, #tpu.memory_space<vmem>>, vector<8x384xf32>,
    %c1_57 = arith.constant 1 : index
    %c0_58 = arith.constant 0 : index
    %c36_59 = arith.constant 36 : index
    %45 = vector.load %arg2[%c1_57, %c0_58, %c36_59] : memref<2x8x512xf32, #tpu.memory_space<vmem>>, vector<1x8x384xf32>
    %46 = vector.shape_cast %45 : vector<1x8x384xf32> to vector<8x384xf32>
    %c48_60 = arith.constant 48 : index
    %c384_61 = arith.constant 384 : index
    %47 = vector.load %arg5[%c48_60, %c384_61] : memref<72x768xf32, #tpu.memory_space<vmem>>, vector<8x384xf32>
    tpu.vector_store %arg5[%c48_60, %c384_61], %46 {strides = array<i32>} : memref<72x768xf32, #tpu.memory_space<vmem>>, vector<8x384xf32>,
    %c1_62 = arith.constant 1 : index
    %c0_63 = arith.constant 0 : index
    %c37_64 = arith.constant 37 : index
    %48 = vector.load %arg2[%c1_62, %c0_63, %c37_64] : memref<2x8x512xf32, #tpu.memory_space<vmem>>, vector<1x8x384xf32>
    %49 = vector.shape_cast %48 : vector<1x8x384xf32> to vector<8x384xf32>
    %c56_65 = arith.constant 56 : index
    %c384_66 = arith.constant 384 : index
    %50 = vector.load %arg5[%c56_65, %c384_66] : memref<72x768xf32, #tpu.memory_space<vmem>>, vector<8x384xf32>
    tpu.vector_store %arg5[%c56_65, %c384_66], %49 {strides = array<i32>} : memref<72x768xf32, #tpu.memory_space<vmem>>, vector<8x384xf32>,
    %c1_67 = arith.constant 1 : index
    %c0_68 = arith.constant 0 : index
    %c38_69 = arith.constant 38 : index
    %51 = vector.load %arg2[%c1_67, %c0_68, %c38_69] : memref<2x8x512xf32, #tpu.memory_space<vmem>>, vector<1x8x384xf32>
    %52 = vector.shape_cast %51 : vector<1x8x384xf32> to vector<8x384xf32>
    %c64_70 = arith.constant 64 : index
    %c384_71 = arith.constant 384 : index
    %53 = vector.load %arg5[%c64_70, %c384_71] : memref<72x768xf32, #tpu.memory_space<vmem>>, vector<8x384xf32>
    tpu.vector_store %arg5[%c64_70, %c384_71], %52 {strides = array<i32>} : memref<72x768xf32, #tpu.memory_space<vmem>>, vector<8x384xf32>,
    %c0_72 = arith.constant 0 : index
    %c0_73 = arith.constant 0 : index
    %54 = vector.load %arg3[%c0_72, %c0_73] : memref<16x72xf32, #tpu.memory_space<vmem>>, vector<16x72xf32>
    %c0_74 = arith.constant 0 : index
    %c0_75 = arith.constant 0 : index
    %55 = vector.load %arg5[%c0_74, %c0_75] : memref<72x768xf32, #tpu.memory_space<vmem>>, vector<72x768xf32>
    %cst = arith.constant dense<0.000000e+00> : vector<16x768xf32>
    %56 = tpu.matmul %54, %55, %cst {dimension_numbers = #tpu.dot_dimension_numbers<[1], [0], [0], [1], [0, 0, 1, 1], [], []>} : vector<16x72xf32>, vector<72x768xf32>, vector<16x768xf32> -> vector<16x768xf32>
    %57 = vector.extract_strided_slice %56 {offsets = [0, 0], sizes = [16, 384], strides = [1, 1]} : vector<16x768xf32> to vector<16x384xf32>
    %c0_76 = arith.constant 0 : index
    %c0_77 = arith.constant 0 : index
    %c0_78 = arith.constant 0 : index
    %58 = vector.load %arg4[%c0_76, %c0_77, %c0_78] : memref<2x16x384xf32, #tpu.memory_space<vmem>>, vector<1x16x384xf32>
    %59 = vector.shape_cast %58 : vector<1x16x384xf32> to vector<16x384xf32>
    %60 = vector.shape_cast %57 : vector<16x384xf32> to vector<1x16x384xf32>
    tpu.vector_store %arg4[%c0_76, %c0_77, %c0_78], %60 {strides = array<i32>} : memref<2x16x384xf32, #tpu.memory_space<vmem>>, vector<1x16x384xf32>,
    %61 = vector.extract_strided_slice %56 {offsets = [0, 384], sizes = [16, 384], strides = [1, 1]} : vector<16x768xf32> to vector<16x384xf32>
    %c1_79 = arith.constant 1 : index
    %c0_80 = arith.constant 0 : index
    %c0_81 = arith.constant 0 : index
    %62 = vector.load %arg4[%c1_79, %c0_80, %c0_81] : memref<2x16x384xf32, #tpu.memory_space<vmem>>, vector<1x16x384xf32>
    %63 = vector.shape_cast %62 : vector<1x16x384xf32> to vector<16x384xf32>
    %64 = vector.shape_cast %61 : vector<16x384xf32> to vector<1x16x384xf32>
    tpu.vector_store %arg4[%c1_79, %c0_80, %c0_81], %64 {strides = array<i32>} : memref<2x16x384xf32, #tpu.memory_space<vmem>>, vector<1x16x384xf32>,
    return
  }
  func.func @transform_0(%arg0: i32, %arg1: i32) -> (i32, i32, i32) {
    %c0_i32 = arith.constant 0 : i32
    %c0_i32_0 = arith.constant 0 : i32
    %c0_i32_1 = arith.constant 0 : i32
    return %arg0, %c0_i32, %c0_i32_0 : i32, i32, i32
  }
  func.func @transform_1(%arg0: i32, %arg1: i32) -> (i32, i32) {
    %c0_i32 = arith.constant 0 : i32
    %c0_i32_0 = arith.constant 0 : i32
    %c0_i32_1 = arith.constant 0 : i32
    return %c0_i32, %c0_i32_0 : i32, i32
  }
  func.func @transform_2(%arg0: i32, %arg1: i32) -> (i32, i32, i32) {
    %c0_i32 = arith.constant 0 : i32
    %c0_i32_0 = arith.constant 0 : i32
    return %arg0, %c0_i32, %arg1 : i32, i32, i32
  }
}

</mosaic_0001>

<bundles_post_ra>
// kernel: tpu_custom_call.1
= control target key start
LH: loop header
LB: loop body
LE: loop exit
PB: predicated region body
PF: predicated region fallthrough
CT: control target
= control target key end

     0   :  { %7 = vsyncpa [#allocation4], 0  ;;  %s1223_s0 = inlined_call_operand.hbm [shape: f32[2,8,512], index: 0, kind: input, shape index: {}]   ;;  %s1224_s1 = inlined_call_operand.hbm [shape: f32[16,72], index: 1, kind: input, shape index: {}]   ;;  %s1225_s2 = inlined_call_operand.hbm [shape: f32[2,16,384], index: 2, kind: output, shape index: {}]  }
   0x1   :  { %8 = vsyncpa [#allocation7], 0 }
   0x2   :  { %9 = vsyncpa [#allocation5], 0  ;;  %s14_s11 = sshll.u32 %s1223_s0, 4  ;;  %s984_s12 = smov [#allocation3]   ;;  %s15_s11 = int_to_ptr.hbm [resolvable:$true] %s14_s11 }
   0x3   :  { %s16_s13 = sshll.u32 %s984_s12, 4  ;;  %s27_s16 = sshll.u32 %s1224_s1, 4  ;;  %s17_s13 = int_to_ptr.vmem [resolvable:$true] %s16_s13  ;;  %s28_s16 = int_to_ptr.hbm [resolvable:$true] %s27_s16 }
   0x4   :  { %s985_s17 = smov 512   ;;  %s986_s18 = smov 32  }
   0x5   :  { %22 = dma.hbm_to_vmem [thread:$0]  %s15_s11, 1024, %s17_s13, [#allocation4], %s985_s17, %s985_s17, %s986_s18  }
   0x6   :  { %s987_s19 = smov [#allocation6]   ;;  %s988_s21 = smov 128  }
   0x7   :  { %s29_s20 = sshll.u32 %s987_s19, 4  ;;  %s989_s22 = smov 8   ;;  %s30_s20 = int_to_ptr.vmem [resolvable:$true] %s29_s20 }
   0x8   :  { %35 = dma.hbm_to_vmem [thread:$0]  %s28_s16, 256, %s30_s20, [#allocation7], %s988_s21, %s988_s21, %s989_s22  }
   0x9   :  { %978 = dma.done.wait [#allocation4], 1024  }
   0xa   :  { %979 = vsyncadd [#allocation4], 4294966272 }
   0xb   :  { %980 = dma.done.wait [#allocation7], 256  }
   0xc   :  { %981 = vsyncadd [#allocation7], 4294967040  ;;  %v1022_v0 = vld [vmem:[#allocation3 + $0x10] sm:$0xff]  ;;  %v235_v1 = vld [vmem:[#allocation3 + $0x18] sm:$0xff]  ;;  %s990_s0 = smov 90   ;;  %s991_s1 = smov 91  }
   0xd   :  { %v746_v2 = vpack.i.bf16 %v235_v1, %v1022_v0  ;;  %s992_s23 = smov 92   ;;  %v1028_v3 = vld [vmem:[#allocation3 + $0x20] sm:$0xff]  ;;  %v1030_v4 = vld [vmem:[#allocation3 + $0x28] sm:$0xff]  ;;  %s993_s24 = smov 108   ;;  %v1046_v9 = vld [vmem:[#allocation3 + $0x30] sm:$0xff]  ;;  %vm248_vm0 = vcmask 736256  }
   0xe   :  { %v751_v5 = vpack.i.bf16 %v1030_v4, %v1028_v3  ;;  %v1037_v6 = vld [vmem:[#allocation3] sm:$0xff]  ;;  %v1039_v7 = vld [vmem:[#allocation3 + $0x8] sm:$0xff]  ;;  %s994_s25 = smov 109   ;;  %s995_s26 = smov 110   ;;  %v443_v10 = vld [vmem:[#allocation3 + $0x38] sm:$0xff]  ;;  %vm222_vm1 = vcmask 744448  }
   0xf   :  { %747 = vrot.lane.b32.xlu0 %v746_v2, %s990_s0  ;;  %757 = vrot.lane.b32.xlu1 %v746_v2, %s991_s1  ;;  %v781_v8 = vpack.i.bf16 %v1039_v7, %v1037_v6  ;;  %s996_s27 = smov 126   ;;  %s997_s28 = smov 127   ;;  %v856_v11 = vpack.i.bf16 %v443_v10, %v1046_v9  ;;  %vm196_vm2 = vcmask 752640   ;;  %vm170_vm3 = vcmask 883712  }
  0x10   :  { %767 = vrot.lane.b32.xlu2 %v746_v2, %s992_s23  ;;  %vm144_vm4 = vcmask 891904   ;;  %vm118_vm5 = vcmask 900096   ;;  %vm92_vm6 = vcmask 1031168   ;;  %vm66_vm7 = vcmask 1039360   ;;  %s998_s29 = smov [#allocation8]   ;;  %s685_s5 = sshll.u32 %s1225_s2, 4  ;;  %s686_s5 = int_to_ptr.hbm [resolvable:$true] %s685_s5 }
  0x11   :  { %vm521_vm8 = vcmask 588800   ;;  %s683_s30 = sshll.u32 %s998_s29, 4  ;;  %s999_s6 = smov 384   ;;  %s684_s30 = int_to_ptr.vmem [resolvable:$true] %s683_s30 }
  0x12   :  { %s1000_s7 = smov 24  }
  0x17   :  { %752 = vrot.lane.b32.xlu0 %v751_v5, %s990_s0  ;;  %762 = vrot.lane.b32.xlu1 %v751_v5, %s991_s1 }
  0x18   :  { %772 = vrot.lane.b32.xlu2 %v751_v5, %s992_s23 }
  0x1f   :  { %782 = vrot.lane.b32.xlu1 %v781_v8, %s990_s0  ;;  %777 = vrot.lane.b32.xlu0 %v746_v2, %s993_s24 }
  0x20   :  { %787 = vrot.lane.b32.xlu2 %v751_v5, %s993_s24 }
  0x27   :  { %797 = vrot.lane.b32.xlu1 %v781_v8, %s991_s1  ;;  %792 = vrot.lane.b32.xlu0 %v746_v2, %s994_s25 }
  0x28   :  { %802 = vrot.lane.b32.xlu2 %v751_v5, %s994_s25 }
  0x2f   :  { %812 = vrot.lane.b32.xlu1 %v781_v8, %s992_s23  ;;  %807 = vrot.lane.b32.xlu0 %v746_v2, %s995_s26 }
  0x30   :  { %817 = vrot.lane.b32.xlu2 %v751_v5, %s995_s26 }
  0x37   :  { %827 = vrot.lane.b32.xlu1 %v781_v8, %s993_s24  ;;  %822 = vrot.lane.b32.xlu0 %v746_v2, %s996_s27 }
  0x38   :  { %832 = vrot.lane.b32.xlu2 %v751_v5, %s996_s27 }
  0x3f   :  { %842 = vrot.lane.b32.xlu1 %v781_v8, %s994_s25  ;;  %837 = vrot.lane.b32.xlu0 %v746_v2, %s997_s28 }
  0x40   :  { %847 = vrot.lane.b32.xlu2 %v751_v5, %s997_s28 }
  0x47   :  { %857 = vrot.lane.b32.xlu1 %v856_v11, %s990_s0  ;;  %852 = vrot.lane.b32.xlu0 %v781_v8, %s995_s26 }
  0x48   :  { %862 = vrot.lane.b32.xlu2 %v781_v8, %s996_s27 }
  0x4f   :  { %867 = vrot.lane.b32.xlu0 %v856_v11, %s991_s1  ;;  %872 = vrot.lane.b32.xlu1 %v781_v8, %s997_s28 }
  0x50   :  { %877 = vrot.lane.b32.xlu2 %v856_v11, %s992_s23 }
  0x57   :  { %882 = vrot.lane.b32.xlu0 %v856_v11, %s993_s24  ;;  %887 = vrot.lane.b32.xlu1 %v856_v11, %s994_s25 }
  0x58   :  { %892 = vrot.lane.b32.xlu2 %v856_v11, %s995_s26 }
  0x5f   :  { %897 = vrot.lane.b32.xlu0 %v856_v11, %s996_s27  ;;  %902 = vrot.lane.b32.xlu1 %v856_v11, %s997_s28 }
  0x6a   :  { %v1052_v12 = vpop.permute.xlu2 %767 }
  0x6b   :  { %v770_v15 = vunpack.i.h.bf16 %v1052_v12  ;;  %v769_v16 = vunpack.i.l.bf16 %v1052_v12 }
  0x6d   :  { %v199_v26 = vsel %vm196_vm2, %v769_v16, %v770_v15 }
  0x72   :  { %v1054_v13 = vpop.permute.xlu2 %772 }
  0x73   :  { %v775_v27 = vunpack.i.h.bf16 %v1054_v13  ;;  %v774_v28 = vunpack.i.l.bf16 %v1054_v13 }
  0x75   :  { %v406_v40 = vsel %vm196_vm2, %v774_v28, %v775_v27 }
  0x7a   :  { %v1056_v14 = vpop.permute.xlu2 %787 }
  0x7b   :  { %v790_v36 = vunpack.i.h.bf16 %v1056_v14  ;;  %v789_v37 = vunpack.i.l.bf16 %v1056_v14 }
  0x7d   :  { %v381_v43 = vsel %vm170_vm3, %v789_v37, %v790_v36 }
  0x81   :  { %v748_v17 = vpop.permute.xlu0 %747  ;;  %v1060_v18 = vpop.permute.xlu1 %757 }
  0x82   :  { %v750_v19 = vunpack.i.h.bf16 %v748_v17  ;;  %v749_v20 = vunpack.i.l.bf16 %v748_v17  ;;  %v760_v21 = vunpack.i.h.bf16 %v1060_v18  ;;  %v759_v22 = vunpack.i.l.bf16 %v1060_v18  ;;  %v1064_v23 = vpop.permute.xlu2 %802 }
  0x83   :  { %v805_v41 = vunpack.i.h.bf16 %v1064_v23  ;;  %v804_v42 = vunpack.i.l.bf16 %v1064_v23 }
  0x84   :  { %v251_v24 = vsel %vm248_vm0, %v749_v20, %v750_v19  ;;  %v225_v25 = vsel %vm222_vm1, %v759_v22, %v760_v21 }
  0x85   :  { %581 = vmatpush.msra.mxu2 %v251_v24  ;;  %v356_v55 = vsel %vm144_vm4, %v804_v42, %v805_v41 }
  0x87   :  { %582 = vmatpush.msra.mxu2 %v225_v25 }
  0x89   :  { %v1075_v29 = vpop.permute.xlu0 %752  ;;  %v1077_v30 = vpop.permute.xlu1 %762  ;;  %583 = vmatpush.msra.mxu2 %v199_v26 }
  0x8a   :  { %v755_v31 = vunpack.i.h.bf16 %v1075_v29  ;;  %v754_v32 = vunpack.i.l.bf16 %v1075_v29  ;;  %v765_v33 = vunpack.i.h.bf16 %v1077_v30  ;;  %v764_v34 = vunpack.i.l.bf16 %v1077_v30  ;;  %v1083_v35 = vpop.permute.xlu2 %817 }
  0x8b   :  { %v820_v44 = vunpack.i.h.bf16 %v1083_v35  ;;  %v819_v45 = vunpack.i.l.bf16 %v1083_v35 }
  0x8c   :  { %v456_v38 = vsel %vm248_vm0, %v754_v32, %v755_v31  ;;  %v431_v39 = vsel %vm222_vm1, %v764_v34, %v765_v33 }
  0x8d   :  { %604 = vmatpush.msra.mxu3 %v456_v38  ;;  %v331_v59 = vsel %vm118_vm5, %v819_v45, %v820_v44 }
  0x8f   :  { %605 = vmatpush.msra.mxu3 %v431_v39 }
  0x91   :  { %v783_v46 = vpop.permute.xlu1 %782  ;;  %v1103_v47 = vpop.permute.xlu0 %777  ;;  %606 = vmatpush.msra.mxu3 %v406_v40 }
  0x92   :  { %v785_v48 = vunpack.i.h.bf16 %v783_v46  ;;  %v784_v49 = vunpack.i.l.bf16 %v783_v46  ;;  %v1105_v50 = vpop.permute.xlu2 %832  ;;  %v780_v51 = vunpack.i.h.bf16 %v1103_v47  ;;  %v779_v52 = vunpack.i.l.bf16 %v1103_v47 }
  0x93   :  { %v835_v53 = vunpack.i.h.bf16 %v1105_v50  ;;  %v834_v54 = vunpack.i.l.bf16 %v1105_v50  ;;  %607 = vmatpush.msra.mxu3 %v381_v43  ;;  %v1141_v43 = vld [vmem:[#allocation6] sm:$0xff] }
  0x94   :  { %v250_v56 = vsel %vm248_vm0, %v785_v48, %v749_v20  ;;  %v173_v57 = vsel %vm170_vm3, %v779_v52, %v780_v51  ;;  %v249_v58 = vsel %vm248_vm0, %v784_v49, %v785_v48 }
  0x95   :  { %558 = vmatpush.msra.mxu1 %v250_v56  ;;  %584 = vmatpush.msra.mxu2 %v173_v57  ;;  %v306_v60 = vsel %vm92_vm6, %v834_v54, %v835_v53 }
  0x96   :  { %535 = vmatpush.msra.mxu0 %v249_v58  ;;  %608 = vmatpush.msra.mxu3 %v356_v55  ;;  %v1148_v55 = vld [vmem:[#allocation6 + $0x8] sm:$0xff] }
  0x98   :  { %609 = vmatpush.msra.mxu3 %v331_v59 }
  0x99   :  { %v798_v61 = vpop.permute.xlu1 %797  ;;  %v793_v62 = vpop.permute.xlu0 %792 }
  0x9a   :  { %v800_v63 = vunpack.i.h.bf16 %v798_v61  ;;  %v799_v1 = vunpack.i.l.bf16 %v798_v61  ;;  %v1123_v2 = vpop.permute.xlu2 %847  ;;  %v795_v5 = vunpack.i.h.bf16 %v793_v62  ;;  %v794_v8 = vunpack.i.l.bf16 %v793_v62  ;;  %610 = vmatpush.msra.mxu3 %v306_v60 }
  0x9b   :  { %v850_v10 = vunpack.i.h.bf16 %v1123_v2  ;;  %v849_v11 = vunpack.i.l.bf16 %v1123_v2 }
  0x9c   :  { %v224_v15 = vsel %vm222_vm1, %v800_v63, %v759_v22  ;;  %v147_v17 = vsel %vm144_vm4, %v794_v8, %v795_v5  ;;  %v223_v19 = vsel %vm222_vm1, %v799_v1, %v800_v63 }
  0x9d   :  { %559 = vmatpush.msra.mxu1 %v224_v15  ;;  %585 = vmatpush.msra.mxu2 %v147_v17  ;;  %v281_v20 = vsel %vm66_vm7, %v849_v11, %v850_v10 }
  0x9e   :  { %536 = vmatpush.msra.mxu0 %v223_v19  ;;  %611 = vmatpush.msra.mxu3 %v281_v20 }
  0xa0   :  { %612 = vmatpush.msra.mxu3 %v1028_v3 }
  0xa1   :  { %v813_v21 = vpop.permute.xlu1 %812  ;;  %v808_v24 = vpop.permute.xlu0 %807  ;;  %705 = vmatmul.msk.f32.vlgmr.msra.gmra.mxu3 %vm521_vm8, %v1141_v43 }
  0xa2   :  { %v815_v18 = vunpack.i.h.bf16 %v813_v21  ;;  %v814_v25 = vunpack.i.l.bf16 %v813_v21  ;;  %v810_v22 = vunpack.i.h.bf16 %v808_v24  ;;  %v809_v26 = vunpack.i.l.bf16 %v808_v24  ;;  %v863_v56 = vpop.permute.xlu2 %862 }
  0xa3   :  { %v864_v59 = vunpack.i.l.bf16 %v863_v56  ;;  %v865_v60 = vunpack.i.h.bf16 %v863_v56 }
  0xa4   :  { %v198_v28 = vsel %vm196_vm2, %v815_v18, %v769_v16  ;;  %v121_v32 = vsel %vm118_vm5, %v809_v26, %v810_v22  ;;  %v197_v34 = vsel %vm196_vm2, %v814_v25, %v815_v18 }
  0xa5   :  { %560 = vmatpush.msra.mxu1 %v198_v28  ;;  %586 = vmatpush.msra.mxu2 %v121_v32  ;;  %v93_v11 = vsel %vm92_vm6, %v864_v59, %v865_v60 }
  0xa6   :  { %537 = vmatpush.msra.mxu0 %v197_v34 }
  0xa9   :  { %v828_v37 = vpop.permute.xlu1 %827  ;;  %v823_v38 = vpop.permute.xlu0 %822  ;;  %706 = vmatmul.msk.f32.gmra.mxu3 %vm521_vm8, %v1148_v55 }
  0xaa   :  { %v830_v3 = vunpack.i.h.bf16 %v828_v37  ;;  %v829_v39 = vunpack.i.l.bf16 %v828_v37  ;;  %v825_v40 = vunpack.i.h.bf16 %v823_v38  ;;  %v824_v42 = vunpack.i.l.bf16 %v823_v38  ;;  %v878_v20 = vpop.permute.xlu2 %877 }
  0xab   :  { %v880_v24 = vunpack.i.h.bf16 %v878_v20  ;;  %v879_v28 = vunpack.i.l.bf16 %v878_v20 }
  0xac   :  { %v172_v12 = vsel %vm170_vm3, %v830_v3, %v779_v52  ;;  %v95_v16 = vsel %vm92_vm6, %v824_v42, %v825_v40  ;;  %v171_v45 = vsel %vm170_vm3, %v829_v39, %v830_v3  ;;  %v94_v21 = vsel %vm92_vm6, %v865_v60, %v824_v42 }
  0xad   :  { %561 = vmatpush.msra.mxu1 %v172_v12  ;;  %587 = vmatpush.msra.mxu2 %v95_v16  ;;  %v408_v3 = vsel %vm196_vm2, %v879_v28, %v880_v24  ;;  %v407_v39 = vsel %vm196_vm2, %v775_v27, %v879_v28 }
  0xae   :  { %538 = vmatpush.msra.mxu0 %v171_v45 }
  0xb1   :  { %v843_v46 = vpop.permute.xlu1 %842  ;;  %v838_v47 = vpop.permute.xlu0 %837 }
  0xb2   :  { %v845_v48 = vunpack.i.h.bf16 %v843_v46  ;;  %v844_v49 = vunpack.i.l.bf16 %v843_v46  ;;  %v840_v51 = vunpack.i.h.bf16 %v838_v47  ;;  %v839_v54 = vunpack.i.l.bf16 %v838_v47  ;;  %v893_v40 = vpop.permute.xlu2 %892 }
  0xb4   :  { %v146_v52 = vsel %vm144_vm4, %v845_v48, %v794_v8  ;;  %v69_v57 = vsel %vm66_vm7, %v839_v54, %v840_v51  ;;  %v145_v58 = vsel %vm144_vm4, %v844_v49, %v845_v48 }
  0xb5   :  { %562 = vmatpush.msra.mxu1 %v146_v52  ;;  %588 = vmatpush.msra.mxu2 %v69_v57 }
  0xb6   :  { %539 = vmatpush.msra.mxu0 %v145_v58 }
  0xb7   :  { %589 = vmatpush.msra.mxu2 %v1022_v0 }
  0xb8   :  { %703 = vmatmul.msk.f32.vlgmr.msra.gmra.mxu2 %vm521_vm8, %v1141_v43 }
  0xb9   :  { %v858_v61 = vpop.permute.xlu1 %857  ;;  %v853_v62 = vpop.permute.xlu0 %852 }
  0xba   :  { %v860_v63 = vunpack.i.h.bf16 %v858_v61  ;;  %v859_v1 = vunpack.i.l.bf16 %v858_v61  ;;  %v855_v5 = vunpack.i.h.bf16 %v853_v62  ;;  %v854_v8 = vunpack.i.l.bf16 %v853_v62 }
  0xbc   :  { %v119_v15 = vsel %vm118_vm5, %v854_v8, %v855_v5  ;;  %v120_v17 = vsel %vm118_vm5, %v855_v5, %v809_v26  ;;  %v457_v0 = vsel %vm248_vm0, %v755_v31, %v859_v1  ;;  %v458_v19 = vsel %vm248_vm0, %v859_v1, %v860_v63 }
  0xbd   :  { %540 = vmatpush.msra.mxu0 %v119_v15  ;;  %563 = vmatpush.msra.mxu1 %v120_v17 }
  0xbe   :  { %711 = vmatpush.msrb.mxu2 %v457_v0  ;;  %720 = vmatpush.msrb.mxu3 %v458_v19 }
  0xbf   :  { %564 = vmatpush.msra.mxu1 %v94_v21  ;;  %541 = vmatpush.msra.mxu0 %v93_v11 }
  0xc0   :  { %704 = vmatmul.msk.f32.gmra.mxu2 %vm521_vm8, %v1148_v55 }
  0xc1   :  { %v868_v18 = vpop.permute.xlu0 %867  ;;  %v873_v25 = vpop.permute.xlu1 %872 }
  0xc2   :  { %v870_v29 = vunpack.i.h.bf16 %v868_v18  ;;  %v869_v22 = vunpack.i.l.bf16 %v868_v18  ;;  %v875_v31 = vunpack.i.h.bf16 %v873_v25  ;;  %v874_v26 = vunpack.i.l.bf16 %v873_v25 }
  0xc4   :  { %v67_v32 = vsel %vm66_vm7, %v874_v26, %v875_v31  ;;  %v68_v34 = vsel %vm66_vm7, %v875_v31, %v839_v54  ;;  %v432_v37 = vsel %vm222_vm1, %v765_v33, %v869_v22  ;;  %v433_v38 = vsel %vm222_vm1, %v869_v22, %v870_v29 }
  0xc5   :  { %542 = vmatpush.msra.mxu0 %v67_v32  ;;  %565 = vmatpush.msra.mxu1 %v68_v34 }
  0xc6   :  { %712 = vmatpush.msrb.mxu2 %v432_v37  ;;  %721 = vmatpush.msrb.mxu3 %v433_v38 }
  0xc7   :  { %543 = vmatpush.msra.mxu0 %v1037_v6  ;;  %566 = vmatpush.msra.mxu1 %v1039_v7  ;;  %v895_v6 = vunpack.i.h.bf16 %v893_v40  ;;  %v894_v7 = vunpack.i.l.bf16 %v893_v40 }
  0xc8   :  { %713 = vmatpush.msrb.mxu2 %v407_v39  ;;  %722 = vmatpush.msrb.mxu3 %v408_v3 }
  0xc9   :  { %627 = vmatpush.msrb.mxu0 %v457_v0  ;;  %650 = vmatpush.msrb.mxu1 %v458_v19  ;;  %v883_v30 = vpop.permute.xlu0 %882  ;;  %v888_v33 = vpop.permute.xlu1 %887  ;;  %v333_v48 = vsel %vm118_vm5, %v894_v7, %v895_v6  ;;  %v332_v14 = vsel %vm118_vm5, %v820_v44, %v894_v7 }
  0xca   :  { %v885_v42 = vunpack.i.h.bf16 %v883_v30  ;;  %v884_v12 = vunpack.i.l.bf16 %v883_v30  ;;  %v890_v16 = vunpack.i.h.bf16 %v888_v33  ;;  %v889_v45 = vunpack.i.l.bf16 %v888_v33  ;;  %701 = vmatmul.msk.f32.vlgmr.msra.gmra.mxu1 %vm521_vm8, %v1141_v43  ;;  %699 = vmatmul.msk.f32.vlgmr.msra.gmra.mxu0 %vm521_vm8, %v1141_v43 }
  0xcb   :  { %628 = vmatpush.msrb.mxu0 %v432_v37  ;;  %651 = vmatpush.msrb.mxu1 %v433_v38 }
  0xcc   :  { %v382_v13 = vsel %vm170_vm3, %v790_v36, %v884_v12  ;;  %v383_v27 = vsel %vm170_vm3, %v884_v12, %v885_v42  ;;  %v358_v46 = vsel %vm144_vm4, %v889_v45, %v890_v16  ;;  %v357_v47 = vsel %vm144_vm4, %v805_v41, %v889_v45 }
  0xcd   :  { %629 = vmatpush.msrb.mxu0 %v407_v39  ;;  %652 = vmatpush.msrb.mxu1 %v408_v3 }
  0xce   :  { %714 = vmatpush.msrb.mxu2 %v382_v13  ;;  %723 = vmatpush.msrb.mxu3 %v383_v27 }
  0xcf   :  { %630 = vmatpush.msrb.mxu0 %v382_v13  ;;  %653 = vmatpush.msrb.mxu1 %v383_v27 }
  0xd0   :  { %715 = vmatpush.msrb.mxu2 %v357_v47  ;;  %724 = vmatpush.msrb.mxu3 %v358_v46 }
  0xd1   :  { %631 = vmatpush.msrb.mxu0 %v357_v47  ;;  %654 = vmatpush.msrb.mxu1 %v358_v46  ;;  %v898_v36 = vpop.permute.xlu0 %897  ;;  %v903_v49 = vpop.permute.xlu1 %902 }
  0xd2   :  { %716 = vmatpush.msrb.mxu2 %v332_v14  ;;  %v900_v51 = vunpack.i.h.bf16 %v898_v36  ;;  %v899_v54 = vunpack.i.l.bf16 %v898_v36  ;;  %v905_v56 = vunpack.i.h.bf16 %v903_v49  ;;  %v904_v23 = vunpack.i.l.bf16 %v903_v49  ;;  %725 = vmatpush.msrb.mxu3 %v333_v48 }
  0xd3   :  { %632 = vmatpush.msrb.mxu0 %v332_v14  ;;  %655 = vmatpush.msrb.mxu1 %v333_v48 }
  0xd4   :  { %700 = vmatmul.msk.f32.gmra.mxu0 %vm521_vm8, %v1148_v55  ;;  %v307_v35 = vsel %vm92_vm6, %v835_v53, %v899_v54  ;;  %v308_v41 = vsel %vm92_vm6, %v899_v54, %v900_v51  ;;  %702 = vmatmul.msk.f32.gmra.mxu1 %vm521_vm8, %v1148_v55  ;;  %v283_v44 = vsel %vm66_vm7, %v904_v23, %v905_v56 }
  0xd5   :  { %633 = vmatpush.msrb.mxu0 %v307_v35  ;;  %717 = vmatpush.msrb.mxu2 %v307_v35  ;;  %v282_v52 = vsel %vm66_vm7, %v850_v10, %v904_v23 }
  0xd6   :  { %656 = vmatpush.msrb.mxu1 %v308_v41  ;;  %726 = vmatpush.msrb.mxu3 %v308_v41 }
  0xd7   :  { %634 = vmatpush.msrb.mxu0 %v282_v52  ;;  %718 = vmatpush.msrb.mxu2 %v282_v52 }
  0xd8   :  { %657 = vmatpush.msrb.mxu1 %v283_v44  ;;  %727 = vmatpush.msrb.mxu3 %v283_v44 }
  0xd9   :  { %719 = vmatpush.msrb.mxu2 %v1030_v4  ;;  %635 = vmatpush.msrb.mxu0 %v1030_v4 }
  0xda   :  { %728 = vmatpush.msrb.mxu3 %v1046_v9  ;;  %708 = vmatmul.msk.f32.vlgmr.msrb.gmra.mxu2 %vm521_vm8, %v1148_v55 }
  0xdb   :  { %710 = vmatmul.msk.f32.vlgmr.msrb.gmra.mxu3 %vm521_vm8, %v1148_v55  ;;  %658 = vmatpush.msrb.mxu1 %v1046_v9 }
  0xdc   :  { %707 = vmatmul.msk.f32.vlgmr.msrb.gmra.mxu0 %vm521_vm8, %v1141_v43  ;;  %709 = vmatmul.msk.f32.vlgmr.msrb.gmra.mxu1 %vm521_vm8, %v1141_v43 }
 0x124   :  { %v614_v50 = vpop.f32.mrf.mxu3 }
 0x125   :  { %673 = vst [vmem:[#allocation8 + $0x30] sm:$0xff] %v614_v50 }
 0x12c   :  { %v617_v53 = vpop.f32.mrf.mxu3 }
 0x12d   :  { %676 = vst [vmem:[#allocation8 + $0x48] sm:$0xff] %v617_v53 }
 0x13b   :  { %v591_v4 = vpop.f32.mrf.mxu2 }
 0x13c   :  { %668 = vst [vmem:[#allocation8 + $0x10] sm:$0xff] %v591_v4 }
 0x143   :  { %v594_v2 = vpop.f32.mrf.mxu2 }
 0x144   :  { %671 = vst [vmem:[#allocation8 + $0x28] sm:$0xff] %v594_v2 }
 0x147   :  { %v568_v10 = vpop.f32.mrf.mxu1  ;;  %v545_v57 = vpop.f32.mrf.mxu0 }
 0x148   :  { %667 = vst [vmem:[#allocation8 + $0x8] sm:$0xff] %v568_v10 }
 0x149   :  { %666 = vst [vmem:[#allocation8] sm:$0xff] %v545_v57 }
 0x151   :  { %v548_v55 = vpop.f32.mrf.mxu0  ;;  %v571_v9 = vpop.f32.mrf.mxu1 }
 0x152   :  { %669 = vst [vmem:[#allocation8 + $0x18] sm:$0xff] %v548_v55 }
 0x153   :  { %670 = vst [vmem:[#allocation8 + $0x20] sm:$0xff] %v571_v9 }
 0x159   :  { %v637_v58 = vpop.f32.mrf.mxu0  ;;  %v660_v59 = vpop.f32.mrf.mxu1 }
 0x15a   :  { %674 = vst [vmem:[#allocation8 + $0x38] sm:$0xff] %v637_v58 }
 0x15b   :  { %675 = vst [vmem:[#allocation8 + $0x40] sm:$0xff] %v660_v59 }
 0x15d   :  { %v640_v43 = vpop.f32.mrf.mxu2 }
 0x15e   :  { %677 = vst [vmem:[#allocation8 + $0x50] sm:$0xff] %v640_v43  ;;  %v663_v60 = vpop.f32.mrf.mxu3 }
 0x15f   :  { %678 = vst [vmem:[#allocation8 + $0x58] sm:$0xff] %v663_v60 }
 0x160   :  { %691 = dma.vmem_to_hbm [thread:$0]  %s684_s30, 1536, %s686_s5, [#allocation5], %s999_s6, %s999_s6, %s1000_s7  }
 0x161   :  { %982 = dma.done.wait [#allocation5], 1536  }
 0x162   :  { %983 = vsyncadd [#allocation5], 4294965760 }
 0x163   :  { %696 = vsyncpa [#allocation4], 1 }
 0x164   :  { %697 = vsyncpa [#allocation7], 1 }
 0x165   :  { %698 = vsyncpa [#allocation5], 1 }

</bundles_post_ra>
